<compile_context>
chip_gen: v5e
topology: v5e:2x2
jax: 0.10.0
libtpu: 0.0.40
codegen_flags: <defaults>
</compile_context>

<pallas_src>
import functools
import math

import jax
import jax.numpy as jnp
from jax import lax
from jax.experimental import pallas as pl
from jax.experimental.pallas import tpu as pltpu


VMEM_SPEC = pl.BlockSpec(memory_space=pltpu.MemorySpace.VMEM)

# MXU-native operand dtype for all matmuls (accumulation stays f32).
MATMUL_DTYPE = jnp.bfloat16


# ------------------------------ fused kernel ------------------------------

def mha_residual_fused_kernel(x_ref, w_in_ref, w_lin_ref, p_ref, out_ref, *,
                              num_head, seq_len, embed_dim):
    """Fused mha_with_residual forward.

    x_ref:     (N*L, E)        f32, rows batch-major (n, l)
    w_in_ref:  (E, (2+H)E)     bf16, columns [ Q(pre-scaled) | K | Wvo_h0 | ... ]
    w_lin_ref: (E, E)          bf16, post-MHA linear weight (pre-transposed)
    p_ref:     (1, (6+H)E)     f32 packed [ b_q(scaled) | b_k | 0*HE | b_att | b_lin | gamma | beta ]
    out_ref:   (N*L, E+L)      f32 slab: [ values | head-averaged attention rows ]
    """
    x = x_ref[...]                                     # (rows, E) f32
    rows = x.shape[0]
    E = embed_dim
    L = seq_len
    N = rows // L
    H = num_head
    hd = E // H
    W_in = (2 + H) * E

    pv = p_ref[...]                                    # (1, (6+H)E)
    b_in = pv[:, :W_in]
    b_att = pv[:, W_in:W_in + E]
    b_lin = pv[:, W_in + E:W_in + 2 * E]
    gamma = pv[:, W_in + 2 * E:W_in + 3 * E]
    beta = pv[:, W_in + 3 * E:W_in + 4 * E]

    # ---- fused Q / K / per-head (V @ Wo) projection: one MXU push ----
    proj = jnp.dot(x.astype(MATMUL_DTYPE), w_in_ref[...],
                   preferred_element_type=jnp.float32) + b_in      # (rows, W_in) f32
    proj3 = proj.reshape(N, L, W_in)                   # layout-preserving row split

    attn_out = None     # sum_h P_h @ (X @ Wvo_h)       (N, L, E)
    attn_sum = None     # sum_h P_h                     (N, L, L)
    for h in range(H):                                 # static, fully unrolled
        qh = proj3[:, :, h * hd:(h + 1) * hd].astype(MATMUL_DTYPE)         # (N, L, hd)
        kh = proj3[:, :, E + h * hd:E + (h + 1) * hd].astype(MATMUL_DTYPE)
        voh = proj3[:, :, (2 + h) * E:(3 + h) * E].astype(MATMUL_DTYPE)    # (N, L, E)

        # 1/sqrt(hd) is folded into the Q weights/bias at init.
        s = jnp.einsum('nld,nmd->nlm', qh, kh,
                       preferred_element_type=jnp.float32)                 # (N, L, L)
        m = jnp.max(s, axis=-1, keepdims=True)
        p = jnp.exp(s - m)
        p = p * pl.reciprocal(jnp.sum(p, axis=-1, keepdims=True), approx=True)

        oh = jnp.einsum('nlm,nmd->nld', p.astype(MATMUL_DTYPE), voh,
                        preferred_element_type=jnp.float32)                # (N, L, E)
        if h == 0:
            attn_out, attn_sum = oh, p
        else:
            attn_out, attn_sum = attn_out + oh, attn_sum + p
    # TODO(synk): if num_head grows beyond ~4, move accumulation into a VMEM
    #             scratch + lax.fori_loop(unroll=True) to bound vreg live ranges.

    attn_out = attn_out.reshape(rows, E) + b_att       # MHA output (rows, E)

    # ---- linear + residual + ReLU ----
    y = jnp.dot(attn_out.astype(MATMUL_DTYPE), w_lin_ref[...],
                preferred_element_type=jnp.float32) + b_lin
    y = jnp.maximum(y + x, 0.0)

    # ---- BatchNorm1d, training mode: biased batch stats over all N*L rows ----
    mean = jnp.mean(y, axis=0, keepdims=True)
    var = jnp.mean((y - mean) * (y - mean), axis=0, keepdims=True)
    y = (y - mean) * lax.rsqrt(var + 1e-5) * gamma + beta

    # ---- single consolidated store: [ values | attention rows ] ----
    out_ref[...] = jnp.concatenate(
        [y, attn_sum.reshape(rows, L) * (1.0 / H)], axis=-1)


# ------------------------------ wrapper ------------------------------

def mha_with_residual_forward(kparams, x):
    """x: (L, N, E), batch_first=False.  Returns (values (L, N, E), attn (N, L, L))."""
    L, N, E = x.shape
    H = kparams['num_head']
    # Layout plumbing (plain JAX): batch-major flat rows so attention batches over N.
    x_flat = jnp.transpose(x, (1, 0, 2)).reshape(N * L, E)

    kernel = functools.partial(mha_residual_fused_kernel,
                               num_head=H, seq_len=L, embed_dim=E)
    slab = pl.pallas_call(
        kernel,
        out_shape=jax.ShapeDtypeStruct((N * L, E + L), jnp.float32),
        in_specs=[VMEM_SPEC] * 4,
        out_specs=VMEM_SPEC,
    )(x_flat, kparams['w_in'], kparams['w_lin'], kparams['pvec'])

    values = jnp.transpose(slab[:, :E].reshape(N, L, E), (1, 0, 2))   # back to (L, N, E)
    attn = slab[:, E:].reshape(N, L, L)
    return values, attn


# ------------------------------ parameters ------------------------------

def init_params(key, embed_dim, num_head):
    """Raw parameters in PyTorch layout (f32); consumed by the reference."""
    E = embed_dim
    keys = iter(jax.random.split(key, 8))

    def nrm(shape, s):
        return (s * jax.random.normal(next(keys), shape)).astype(jnp.float32)

    return dict(
        num_head=num_head,
        in_proj_w=nrm((3 * E, E), 0.15),     # MultiheadAttention.in_proj_weight
        in_proj_b=nrm((3 * E,), 0.05),
        out_w=nrm((E, E), 0.15),             # MultiheadAttention.out_proj
        out_b=nrm((E,), 0.05),
        lin_w=nrm((E, E), 0.15),             # post-MHA Linear
        lin_b=nrm((E,), 0.05),
        gamma=(1.0 + 0.1 * jax.random.normal(next(keys), (E,))).astype(jnp.float32),
        beta=(0.1 * jax.random.normal(next(keys), (E,))).astype(jnp.float32),
    )


def pack_kernel_params(raw):
    """Fold / transpose / pack the raw PyTorch-layout params for the fused kernel."""
    H = raw['num_head']
    E = raw['in_proj_w'].shape[1]
    hd = E // H
    scale = 1.0 / math.sqrt(hd)

    wq = raw['in_proj_w'][:E]
    wk = raw['in_proj_w'][E:2 * E]
    wv = raw['in_proj_w'][2 * E:]
    bq = raw['in_proj_b'][:E]
    bk = raw['in_proj_b'][E:2 * E]
    bv = raw['in_proj_b'][2 * E:]
    wo_t = raw['out_w'].T                                    # o @ wo_t form

    # Per-head fold:  concat_h(P_h @ V_h) @ Wo  ==  sum_h P_h @ (X @ Wvo_h)
    wvo = [wv.T[:, h * hd:(h + 1) * hd] @ wo_t[h * hd:(h + 1) * hd, :]
           for h in range(H)]                                # each (E, E), folded in f32
    w_in = jnp.concatenate([wq.T * scale, wk.T] + wvo, axis=1)   # (E, (2+H)E)

    # V bias rides through softmax (rows sum to 1) -> fold into post-attn bias.
    b_att = bv @ wo_t + raw['out_b']
    pvec = jnp.concatenate(
        [bq * scale, bk, jnp.zeros((H * E,), jnp.float32),
         b_att, raw['lin_b'], raw['gamma'], raw['beta']]).reshape(1, -1)

    return dict(num_head=H,
                w_in=w_in.astype(MATMUL_DTYPE),              # bf16 stored at init
                w_lin=raw['lin_w'].T.astype(MATMUL_DTYPE),
                pvec=pvec.astype(jnp.float32))


# ------------------------------ pure-JAX reference ------------------------------

def reference_forward(raw, x):
    """f32 jnp mirror of the PyTorch module (uses the raw PyTorch-layout params)."""
    L, N, E = x.shape
    H = raw['num_head']
    hd = E // H
    w_in, b_in = raw['in_proj_w'], raw['in_proj_b']

    x2 = x.reshape(L * N, E)
    q = x2 @ w_in[:E].T + b_in[:E]
    k = x2 @ w_in[E:2 * E].T + b_in[E:2 * E]
    v = x2 @ w_in[2 * E:].T + b_in[2 * E:]

    def split_heads(t):                                # (L*N, E) -> (N, H, L, hd)
        return t.reshape(L, N, H, hd).transpose(1, 2, 0, 3)

    qh, kh, vh = split_heads(q), split_heads(k), split_heads(v)
    s = jnp.einsum('nhld,nhmd->nhlm', qh, kh) / math.sqrt(hd)
    p = jax.nn.softmax(s, axis=-1)                     # (N, H, L, L)
    oh = jnp.einsum('nhlm,nhmd->nhld', p, vh)
    o = oh.transpose(2, 0, 1, 3).reshape(L * N, E)     # concat heads
    attn_out = o @ raw['out_w'].T + raw['out_b']

    y = attn_out @ raw['lin_w'].T + raw['lin_b']
    y = jnp.maximum(y.reshape(L, N, E) + x, 0.0)

    mean = jnp.mean(y, axis=(0, 1), keepdims=True)
    var = jnp.mean((y - mean) ** 2, axis=(0, 1), keepdims=True)
    y = (y - mean) * lax.rsqrt(var + 1e-5) * raw['gamma'] + raw['beta']
    return y, jnp.mean(p, axis=1)                      # attn head-averaged (N, L, L)


# ------------------------------ main ------------------------------

if __name__ == "__main__":
    SEQ_LEN, BATCH, EMBED_DIM, NUM_HEAD = 8, 4, 8, 2   # N*L = 32 (multiple of 8)

    key = jax.random.PRNGKey(0)
    k_params, k_x = jax.random.split(key)
    raw_params = init_params(k_params, EMBED_DIM, NUM_HEAD)
    kparams = pack_kernel_params(raw_params)
    x = jax.random.normal(k_x, (SEQ_LEN, BATCH, EMBED_DIM), dtype=jnp.float32)

    values, attn = jax.block_until_ready(mha_with_residual_forward(kparams, x))
    ref_values, ref_attn = reference_forward(raw_params, x)

    assert values.shape == (SEQ_LEN, BATCH, EMBED_DIM)
    assert attn.shape == (BATCH, SEQ_LEN, SEQ_LEN)
    assert bool(jnp.all(jnp.isfinite(values))) and bool(jnp.all(jnp.isfinite(attn)))

    # Tolerances account for bf16 MXU operands (incl. folded Wvo) + approx
    # reciprocal softmax; structural errors (wrong attention axis, missing
    # residual, wrong BN axis, bad fold) would show up as O(0.5) deviations.
    err_v = float(jnp.max(jnp.abs(values - ref_values)))
    err_a = float(jnp.max(jnp.abs(attn - ref_attn)))
    row_err = float(jnp.max(jnp.abs(jnp.sum(attn, axis=-1) - 1.0)))
    assert err_v < 1e-1, f"values max abs err {err_v}"
    assert err_a < 5e-2, f"attn max abs err {err_a}"
    assert row_err < 5e-3, f"attn rows not normalized, err {row_err}"

    print("KERNEL_OK")
</pallas_src>

<mosaic_0001>
module attributes {stable_mosaic.version = 11 : i64} {
  func.func @mha_residual_fused_kernel(%arg0: memref<32x8xf32, #tpu.memory_space<vmem>>, %arg1: memref<8x32xbf16, #tpu.memory_space<vmem>>, %arg2: memref<8x8xbf16, #tpu.memory_space<vmem>>, %arg3: memref<1x64xf32, #tpu.memory_space<vmem>>, %arg4: memref<32x16xf32, #tpu.memory_space<vmem>>) attributes {dimension_semantics = [], scalar_prefetch = 0 : i64, scratch_operands = 0 : i64, tpu.core_type = #tpu.core_type<tc>} {
    %c0 = arith.constant 0 : index
    %c0_0 = arith.constant 0 : index
    %0 = vector.load %arg0[%c0, %c0_0] : memref<32x8xf32, #tpu.memory_space<vmem>>, vector<32x8xf32>
    %c0_1 = arith.constant 0 : index
    %c0_2 = arith.constant 0 : index
    %1 = vector.load %arg3[%c0_1, %c0_2] : memref<1x64xf32, #tpu.memory_space<vmem>>, vector<1x64xf32>
    %2 = vector.extract_strided_slice %1 {offsets = [0, 0], sizes = [1, 32], strides = [1, 1]} : vector<1x64xf32> to vector<1x32xf32>
    %3 = vector.extract_strided_slice %1 {offsets = [0, 32], sizes = [1, 8], strides = [1, 1]} : vector<1x64xf32> to vector<1x8xf32>
    %4 = vector.extract_strided_slice %1 {offsets = [0, 40], sizes = [1, 8], strides = [1, 1]} : vector<1x64xf32> to vector<1x8xf32>
    %5 = vector.extract_strided_slice %1 {offsets = [0, 48], sizes = [1, 8], strides = [1, 1]} : vector<1x64xf32> to vector<1x8xf32>
    %6 = vector.extract_strided_slice %1 {offsets = [0, 56], sizes = [1, 8], strides = [1, 1]} : vector<1x64xf32> to vector<1x8xf32>
    %7 = arith.truncf %0 : vector<32x8xf32> to vector<32x8xbf16>
    %c0_3 = arith.constant 0 : index
    %c0_4 = arith.constant 0 : index
    %8 = vector.load %arg1[%c0_3, %c0_4] : memref<8x32xbf16, #tpu.memory_space<vmem>>, vector<8x32xbf16>
    %cst = arith.constant dense<0.000000e+00> : vector<32x32xf32>
    %9 = tpu.matmul %7, %8, %cst {dimension_numbers = #tpu.dot_dimension_numbers<[1], [0], [0], [1], [0, 0, 1, 1], [], []>} : vector<32x8xbf16>, vector<8x32xbf16>, vector<32x32xf32> -> vector<32x32xf32>
    %10 = vector.broadcast %2 : vector<1x32xf32> to vector<32x32xf32>
    %11 = arith.addf %9, %10 : vector<32x32xf32>
    %12 = vector.shape_cast %11 : vector<32x32xf32> to vector<4x8x32xf32>
    %13 = vector.extract_strided_slice %12 {offsets = [0, 0, 0], sizes = [4, 8, 4], strides = [1, 1, 1]} : vector<4x8x32xf32> to vector<4x8x4xf32>
    %14 = arith.truncf %13 : vector<4x8x4xf32> to vector<4x8x4xbf16>
    %15 = vector.extract_strided_slice %12 {offsets = [0, 0, 8], sizes = [4, 8, 4], strides = [1, 1, 1]} : vector<4x8x32xf32> to vector<4x8x4xf32>
    %16 = arith.truncf %15 : vector<4x8x4xf32> to vector<4x8x4xbf16>
    %17 = vector.extract_strided_slice %12 {offsets = [0, 0, 16], sizes = [4, 8, 8], strides = [1, 1, 1]} : vector<4x8x32xf32> to vector<4x8x8xf32>
    %18 = arith.truncf %17 : vector<4x8x8xf32> to vector<4x8x8xbf16>
    "tpu.trace_start"() <{level = 10 : i32, message = "nld,nmd->nlm"}> : () -> ()
    %cst_5 = arith.constant dense<0.000000e+00> : vector<4x8x8xf32>
    %19 = tpu.matmul %14, %16, %cst_5 {dimension_numbers = #tpu.dot_dimension_numbers<[2], [2], [1], [1], [0, 0, 0, 1, 1, 1], [0], [0]>} : vector<4x8x4xbf16>, vector<4x8x4xbf16>, vector<4x8x8xf32> -> vector<4x8x8xf32>
    "tpu.trace_stop"() : () -> ()
    %cst_6 = arith.constant dense<0xFF800000> : vector<4x8xf32>
    %20 = vector.multi_reduction <maximumf>, %19, %cst_6 [2] : vector<4x8x8xf32> to vector<4x8xf32>
    %21 = vector.shape_cast %20 : vector<4x8xf32> to vector<4x8x1xf32>
    %22 = vector.broadcast %21 : vector<4x8x1xf32> to vector<4x8x8xf32>
    %23 = arith.subf %19, %22 : vector<4x8x8xf32>
    %24 = math.exp %23 : vector<4x8x8xf32>
    %cst_7 = arith.constant dense<0.000000e+00> : vector<4x8xf32>
    %25 = vector.multi_reduction <add>, %24, %cst_7 [2] : vector<4x8x8xf32> to vector<4x8xf32>
    %26 = vector.shape_cast %25 : vector<4x8xf32> to vector<4x8x1xf32>
    %27 = tpu.reciprocal %26 {approx = true} : vector<4x8x1xf32> -> vector<4x8x1xf32>
    %28 = vector.broadcast %27 : vector<4x8x1xf32> to vector<4x8x8xf32>
    %29 = arith.mulf %24, %28 : vector<4x8x8xf32>
    %30 = arith.truncf %29 : vector<4x8x8xf32> to vector<4x8x8xbf16>
    "tpu.trace_start"() <{level = 10 : i32, message = "nlm,nmd->nld"}> : () -> ()
    %cst_8 = arith.constant dense<0.000000e+00> : vector<4x8x8xf32>
    %31 = tpu.matmul %30, %18, %cst_8 {dimension_numbers = #tpu.dot_dimension_numbers<[2], [1], [1], [2], [0, 0, 0, 1, 1, 2], [0], [0]>} : vector<4x8x8xbf16>, vector<4x8x8xbf16>, vector<4x8x8xf32> -> vector<4x8x8xf32>
    "tpu.trace_stop"() : () -> ()
    %32 = vector.extract_strided_slice %12 {offsets = [0, 0, 4], sizes = [4, 8, 4], strides = [1, 1, 1]} : vector<4x8x32xf32> to vector<4x8x4xf32>
    %33 = arith.truncf %32 : vector<4x8x4xf32> to vector<4x8x4xbf16>
    %34 = vector.extract_strided_slice %12 {offsets = [0, 0, 12], sizes = [4, 8, 4], strides = [1, 1, 1]} : vector<4x8x32xf32> to vector<4x8x4xf32>
    %35 = arith.truncf %34 : vector<4x8x4xf32> to vector<4x8x4xbf16>
    %36 = vector.extract_strided_slice %12 {offsets = [0, 0, 24], sizes = [4, 8, 8], strides = [1, 1, 1]} : vector<4x8x32xf32> to vector<4x8x8xf32>
    %37 = arith.truncf %36 : vector<4x8x8xf32> to vector<4x8x8xbf16>
    "tpu.trace_start"() <{level = 10 : i32, message = "nld,nmd->nlm"}> : () -> ()
    %cst_9 = arith.constant dense<0.000000e+00> : vector<4x8x8xf32>
    %38 = tpu.matmul %33, %35, %cst_9 {dimension_numbers = #tpu.dot_dimension_numbers<[2], [2], [1], [1], [0, 0, 0, 1, 1, 1], [0], [0]>} : vector<4x8x4xbf16>, vector<4x8x4xbf16>, vector<4x8x8xf32> -> vector<4x8x8xf32>
    "tpu.trace_stop"() : () -> ()
    %cst_10 = arith.constant dense<0xFF800000> : vector<4x8xf32>
    %39 = vector.multi_reduction <maximumf>, %38, %cst_10 [2] : vector<4x8x8xf32> to vector<4x8xf32>
    %40 = vector.shape_cast %39 : vector<4x8xf32> to vector<4x8x1xf32>
    %41 = vector.broadcast %40 : vector<4x8x1xf32> to vector<4x8x8xf32>
    %42 = arith.subf %38, %41 : vector<4x8x8xf32>
    %43 = math.exp %42 : vector<4x8x8xf32>
    %cst_11 = arith.constant dense<0.000000e+00> : vector<4x8xf32>
    %44 = vector.multi_reduction <add>, %43, %cst_11 [2] : vector<4x8x8xf32> to vector<4x8xf32>
    %45 = vector.shape_cast %44 : vector<4x8xf32> to vector<4x8x1xf32>
    %46 = tpu.reciprocal %45 {approx = true} : vector<4x8x1xf32> -> vector<4x8x1xf32>
    %47 = vector.broadcast %46 : vector<4x8x1xf32> to vector<4x8x8xf32>
    %48 = arith.mulf %43, %47 : vector<4x8x8xf32>
    %49 = arith.truncf %48 : vector<4x8x8xf32> to vector<4x8x8xbf16>
    "tpu.trace_start"() <{level = 10 : i32, message = "nlm,nmd->nld"}> : () -> ()
    %cst_12 = arith.constant dense<0.000000e+00> : vector<4x8x8xf32>
    %50 = tpu.matmul %49, %37, %cst_12 {dimension_numbers = #tpu.dot_dimension_numbers<[2], [1], [1], [2], [0, 0, 0, 1, 1, 2], [0], [0]>} : vector<4x8x8xbf16>, vector<4x8x8xbf16>, vector<4x8x8xf32> -> vector<4x8x8xf32>
    "tpu.trace_stop"() : () -> ()
    %51 = arith.addf %31, %50 : vector<4x8x8xf32>
    %52 = arith.addf %29, %48 : vector<4x8x8xf32>
    %53 = vector.shape_cast %51 : vector<4x8x8xf32> to vector<32x8xf32>
    %54 = vector.broadcast %3 : vector<1x8xf32> to vector<32x8xf32>
    %55 = arith.addf %53, %54 : vector<32x8xf32>
    %56 = arith.truncf %55 : vector<32x8xf32> to vector<32x8xbf16>
    %c0_13 = arith.constant 0 : index
    %c0_14 = arith.constant 0 : index
    %57 = vector.load %arg2[%c0_13, %c0_14] : memref<8x8xbf16, #tpu.memory_space<vmem>>, vector<8x8xbf16>
    %cst_15 = arith.constant dense<0.000000e+00> : vector<32x8xf32>
    %58 = tpu.matmul %56, %57, %cst_15 {dimension_numbers = #tpu.dot_dimension_numbers<[1], [0], [0], [1], [0, 0, 1, 1], [], []>} : vector<32x8xbf16>, vector<8x8xbf16>, vector<32x8xf32> -> vector<32x8xf32>
    %59 = vector.broadcast %4 : vector<1x8xf32> to vector<32x8xf32>
    %60 = arith.addf %58, %59 : vector<32x8xf32>
    %61 = arith.addf %60, %0 : vector<32x8xf32>
    %cst_16 = arith.constant 0.000000e+00 : f32
    %62 = vector.broadcast %cst_16 : f32 to vector<32x8xf32>
    %63 = arith.maximumf %61, %62 : vector<32x8xf32>
    %cst_17 = arith.constant dense<0.000000e+00> : vector<8xf32>
    %64 = vector.multi_reduction <add>, %63, %cst_17 [0] : vector<32x8xf32> to vector<8xf32>
    %65 = vector.shape_cast %64 : vector<8xf32> to vector<1x8xf32>
    %cst_18 = arith.constant 3.200000e+01 : f32
    %66 = vector.broadcast %cst_18 : f32 to vector<1x8xf32>
    %67 = arith.divf %65, %66 : vector<1x8xf32>
    %68 = vector.broadcast %67 : vector<1x8xf32> to vector<32x8xf32>
    %69 = arith.subf %63, %68 : vector<32x8xf32>
    %70 = vector.broadcast %67 : vector<1x8xf32> to vector<32x8xf32>
    %71 = arith.subf %63, %70 : vector<32x8xf32>
    %72 = arith.mulf %69, %71 : vector<32x8xf32>
    %cst_19 = arith.constant dense<0.000000e+00> : vector<8xf32>
    %73 = vector.multi_reduction <add>, %72, %cst_19 [0] : vector<32x8xf32> to vector<8xf32>
    %74 = vector.shape_cast %73 : vector<8xf32> to vector<1x8xf32>
    %cst_20 = arith.constant 3.200000e+01 : f32
    %75 = vector.broadcast %cst_20 : f32 to vector<1x8xf32>
    %76 = arith.divf %74, %75 : vector<1x8xf32>
    %77 = vector.broadcast %67 : vector<1x8xf32> to vector<32x8xf32>
    %78 = arith.subf %63, %77 : vector<32x8xf32>
    %cst_21 = arith.constant 9.99999974E-6 : f32
    %79 = vector.broadcast %cst_21 : f32 to vector<1x8xf32>
    %80 = arith.addf %76, %79 : vector<1x8xf32>
    %81 = math.rsqrt %80 : vector<1x8xf32>
    %82 = vector.broadcast %81 : vector<1x8xf32> to vector<32x8xf32>
    %83 = arith.mulf %78, %82 : vector<32x8xf32>
    %84 = vector.broadcast %5 : vector<1x8xf32> to vector<32x8xf32>
    %85 = arith.mulf %83, %84 : vector<32x8xf32>
    %86 = vector.broadcast %6 : vector<1x8xf32> to vector<32x8xf32>
    %87 = arith.addf %85, %86 : vector<32x8xf32>
    %88 = vector.shape_cast %52 : vector<4x8x8xf32> to vector<32x8xf32>
    %cst_22 = arith.constant 5.000000e-01 : f32
    %89 = vector.broadcast %cst_22 : f32 to vector<32x8xf32>
    %90 = arith.mulf %88, %89 : vector<32x8xf32>
    %91 = tpu.concatenate %87, %90 in 1 : vector<32x8xf32>, vector<32x8xf32> -> vector<32x16xf32>
    %c0_23 = arith.constant 0 : index
    %c0_24 = arith.constant 0 : index
    %92 = vector.load %arg4[%c0_23, %c0_24] : memref<32x16xf32, #tpu.memory_space<vmem>>, vector<32x16xf32>
    tpu.vector_store %arg4[%c0_23, %c0_24], %91 {strides = array<i32>} : memref<32x16xf32, #tpu.memory_space<vmem>>, vector<32x16xf32>,
    return
  }
}

</mosaic_0001>

<bundles_post_ra>
// kernel: tpu_custom_call.1
= control target key start
LH: loop header
LB: loop body
LE: loop exit
PB: predicated region body
PF: predicated region fallthrough
CT: control target
= control target key end

     0   :  { %vm36_vm0 = vcmask 1043456   ;;  %vm29_vm1 = vcmask 64512   ;;  %s744_s26 = smov 124   ;;  %s745_s27 = smov 104   ;;  %vm68_vm2 = vcmask 31744   ;;  %vm665_vm7 = vcmask 130048   ;;  %s983_s1 = inlined_call_operand.vmem [shape: bf16[8,32], index: 1, kind: input, shape index: {}]   ;;  %s984_s0 = inlined_call_operand.vmem [shape: f32[32,8], index: 0, kind: input, shape index: {}]   ;;  %s985_s3 = inlined_call_operand.vmem [shape: f32[1,64], index: 3, kind: input, shape index: {}]   ;;  %s986_s2 = inlined_call_operand.vmem [shape: bf16[8,8], index: 2, kind: input, shape index: {}]   ;;  %s987_s4 = inlined_call_operand.vmem [shape: f32[32,16], index: 4, kind: output, shape index: {}]  }
   0x1   :  { %v25_v0 = vld [vmem:[%s983_s1] sm:$0xf]  ;;  %v789_v2 = vld [vmem:[%s984_s0 + $0x8] sm:$0xff]  ;;  %v798_v5 = vld [vmem:[%s984_s0 + $0x10] sm:$0xff]  ;;  %s746_s28 = smov 112   ;;  %s747_s29 = smov 96  }
   0x2   :  { %v784_v1 = vld [vmem:[%s984_s0] sm:$0xff]  ;;  %v38_v3 = vsel %vm36_vm0, %v25_v0, 0  ;;  %v803_v6 = vld [vmem:[%s984_s0 + $0x18] sm:$0xff]  ;;  %s742_s0 = smov 120   ;;  %s748_s30 = smov 72  }
   0x3   :  { %v23_v4 = vpack.c.bf16 %v789_v2, %v784_v1  ;;  %47 = vmatpush.bf16.msra.mxu0 %v38_v3  ;;  %v24_v7 = vpack.c.bf16 %v803_v6, %v798_v5  ;;  %v811_v8 = vld [vmem:[%s985_s3] ss:$0 sm:$0xff]  ;;  %s743_s3 = smov 116   ;;  %s749_s5 = smov 88  }
   0x4   :  { %s750_s6 = smov 80   ;;  %s751_s7 = smov 8  }
   0x6   :  { %674 = vmatmul.msk.bf16.vlgmr.msra.gmra.mxu0 %vm29_vm1, %v23_v4 }
  0x16   :  { %675 = vmatmul.msk.bf16.gmra.mxu0 %vm29_vm1, %v24_v7 }
  0x83   :  { %v49_v9 = vpop.f32.mrf.mxu0 }
  0x84   :  { %v50_v10 = vadd.f32 %v811_v8, %v49_v9 }
  0x86   :  { %v59_v11 = vpack.c.bf16 %v50_v10, %v50_v10 }
  0x88   :  { %v64_v12 = vunpack.c.l.b16 %v59_v11 }
  0x8a   :  { %v814_v13 = vpack.c.b16 %v64_v12, %v64_v12 }
  0x8b   :  { %v51_v14 = vpop.f32.mrf.mxu0 }
  0x8c   :  { %v52_v15 = vadd.f32 %v811_v8, %v51_v14  ;;  %66 = vrot.lane.b32.xlu1 %v814_v13, %s742_s0 }
  0x8e   :  { %v60_v16 = vpack.c.bf16 %v52_v15, %v52_v15 }
  0x90   :  { %v89_v17 = vunpack.c.l.b16 %v60_v16 }
  0x92   :  { %v818_v18 = vpack.c.b16 %v89_v17, %v89_v17 }
  0x93   :  { %v54_v19 = vpop.f32.mrf.mxu0 }
  0x94   :  { %v55_v20 = vadd.f32 %v811_v8, %v54_v19  ;;  %233 = vrot.lane.b32.xlu2 %v818_v18, %s743_s3  ;;  %91 = vrot.lane.b32.xlu0 %v818_v18, %s742_s0 }
  0x95   :  { %210 = vrot.lane.b32.xlu1 %v814_v13, %s743_s3 }
  0x96   :  { %v61_v21 = vpack.c.bf16 %v55_v20, %v55_v20 }
  0x98   :  { %v113_v22 = vunpack.c.l.b16 %v61_v21 }
  0x9a   :  { %v824_v23 = vpack.c.b16 %v113_v22, %v113_v22 }
  0x9b   :  { %v56_v24 = vpop.f32.mrf.mxu0 }
  0x9c   :  { %v57_v25 = vadd.f32 %v811_v8, %v56_v24  ;;  %115 = vrot.lane.b32.xlu0 %v824_v23, %s742_s0  ;;  %208 = vrot.lane.b32.xlu2 %v814_v13, %s744_s26 }
  0x9e   :  { %v62_v26 = vpack.c.bf16 %v57_v25, %v57_v25 }
  0xa0   :  { %v137_v27 = vunpack.c.l.b16 %v62_v26 }
  0xa2   :  { %v829_v28 = vpack.c.b16 %v137_v27, %v137_v27 }
  0xa4   :  { %231 = vrot.lane.b32.xlu0 %v818_v18, %s744_s26  ;;  %256 = vrot.lane.b32.xlu2 %v824_v23, %s743_s3 }
  0xa5   :  { %139 = vrot.lane.b32.xlu1 %v829_v28, %s742_s0 }
  0xac   :  { %279 = vrot.lane.b32.xlu0 %v829_v28, %s743_s3  ;;  %277 = vrot.lane.b32.xlu2 %v829_v28, %s744_s26 }
  0xad   :  { %254 = vrot.lane.b32.xlu1 %v824_v23, %s744_s26 }
  0xb5   :  { %369 = vrot.lane.b32.xlu1 %v818_v18, %s745_s27 }
  0xee   :  { %v234_v29 = vpop.permute.xlu2 %233 }
  0xef   :  { %v239_v41 = vsel %vm68_vm2, %v234_v29, 0 }
  0xf6   :  { %v209_v30 = vpop.permute.xlu2 %208 }
  0xfe   :  { %v257_v31 = vpop.permute.xlu2 %256  ;;  %v67_v32 = vpop.permute.xlu1 %66 }
  0xff   :  { %v73_v33 = vsel %vm68_vm2, %v67_v32, 0  ;;  %v262_v34 = vsel %vm68_vm2, %v257_v31, 0 }
 0x100   :  { %82 = vmatpush.bf16.xpose.msra.mxu1 %v73_v33  ;;  %271 = vmatpush.bf16.xpose.msrb.mxu0 %v262_v34 }
 0x106   :  { %v92_v35 = vpop.permute.xlu0 %91  ;;  %v278_v50 = vpop.permute.xlu2 %277 }
 0x107   :  { %v211_v36 = vpop.permute.xlu1 %210  ;;  %676 = vmatmul.msk.bf16.vlgmr.msra.gmra.mxu1 %vm68_vm2, %v59_v11  ;;  %v97_v37 = vsel %vm68_vm2, %v92_v35, 0 }
 0x108   :  { %106 = vmatpush.bf16.xpose.msra.mxu3 %v97_v37  ;;  %v216_v38 = vsel %vm68_vm2, %v211_v36, 0 }
 0x109   :  { %225 = vmatpush.bf16.xpose.msra.mxu2 %v216_v38 }
 0x10e   :  { %v116_v39 = vpop.permute.xlu0 %115 }
 0x10f   :  { %677 = vmatmul.msk.bf16.vlgmr.msra.gmra.mxu3 %vm68_vm2, %v60_v16  ;;  %v121_v40 = vsel %vm68_vm2, %v116_v39, 0 }
 0x110   :  { %680 = vmatmul.msk.bf16.vlgmr.msra.gmra.mxu2 %vm68_vm2, %v209_v30  ;;  %130 = vmatpush.bf16.xpose.msrb.mxu3 %v121_v40 }
 0x116   :  { %v232_v42 = vpop.permute.xlu0 %231 }
 0x117   :  { %v140_v43 = vpop.permute.xlu1 %139 }
 0x118   :  { %248 = vmatpush.bf16.xpose.msra.mxu3 %v239_v41  ;;  %v145_v44 = vsel %vm68_vm2, %v140_v43, 0 }
 0x119   :  { %154 = vmatpush.bf16.xpose.msrb.mxu1 %v145_v44 }
 0x11e   :  { %v280_v45 = vpop.permute.xlu0 %279 }
 0x11f   :  { %v285_v46 = vsel %vm68_vm2, %v280_v45, 0  ;;  %v255_v47 = vpop.permute.xlu1 %254  ;;  %678 = vmatmul.msk.bf16.vlgmr.msrb.gmra.mxu3 %vm68_vm2, %v61_v21 }
 0x120   :  { %679 = vmatmul.msk.bf16.vlgmr.msrb.gmra.mxu1 %vm68_vm2, %v62_v26  ;;  %682 = vmatmul.msk.bf16.vlgmr.msrb.gmra.mxu0 %vm68_vm2, %v255_v47 }
 0x121   :  { %294 = vmatpush.bf16.xpose.msra.mxu1 %v285_v46 }
 0x127   :  { %v370_v48 = vpop.permute.xlu1 %369 }
 0x128   :  { %v375_v49 = vsel %vm36_vm0, %v370_v48, 0 }
 0x129   :  { %384 = vmatpush.bf16.msrb.mxu3 %v375_v49 }
 0x12f   :  { %681 = vmatmul.msk.bf16.vlgmr.msra.gmra.mxu3 %vm68_vm2, %v232_v42 }
 0x130   :  { %683 = vmatmul.msk.bf16.vlgmr.msra.gmra.mxu1 %vm68_vm2, %v278_v50 }
 0x184   :  { %v84_v51 = vpop.f32.mrf.mxu1 }
 0x185   :  { %v160_v52 = vsel %vm29_vm1, %v84_v51, -inf }
 0x186   :  { %161 = vmax.xlane.f32.xlu2 %v160_v52 }
 0x18c   :  { %v86_v53 = vpop.f32.mrf.mxu1 }
 0x192   :  { %v108_v54 = vpop.f32.mrf.mxu3 }
 0x193   :  { %v227_v55 = vpop.f32.mrf.mxu2  ;;  %v163_v56 = vsel %vm29_vm1, %v108_v54, -inf }
 0x194   :  { %164 = vmax.xlane.f32.xlu2 %v163_v56  ;;  %v300_v57 = vsel %vm29_vm1, %v227_v55, -inf }
 0x195   :  { %301 = vmax.xlane.f32.xlu0 %v300_v57 }
 0x19a   :  { %v110_v58 = vpop.f32.mrf.mxu3 }
 0x19b   :  { %v229_v59 = vpop.f32.mrf.mxu2 }
 0x19d   :  { %v859_v60 = vpop.f32.mrf.mxu1  ;;  %v273_v61 = vpop.f32.mrf.mxu0 }
 0x19e   :  { %v306_v62 = vsel %vm29_vm1, %v273_v61, -inf  ;;  %v169_v7 = vsel %vm29_vm1, %v859_v60, -inf }
 0x19f   :  { %307 = vmax.xlane.f32.xlu0 %v306_v62 }
 0x1a2   :  { %v862_v63 = vpop.f32.mrf.mxu3 }
 0x1a3   :  { %v166_v0 = vsel %vm29_vm1, %v862_v63, -inf }
 0x1a4   :  { %167 = vmax.xlane.f32.xlu2 %v166_v0 }
 0x1a5   :  { %v158_v3 = vpop.f32.mrf.mxu1  ;;  %v275_v4 = vpop.f32.mrf.mxu0 }
 0x1a7   :  { %170 = vmax.xlane.f32.xlu0 %v169_v7 }
 0x1aa   :  { %v134_v9 = vpop.f32.mrf.mxu3 }
 0x1ad   :  { %v296_v10 = vpop.f32.mrf.mxu1 }
 0x1ae   :  { %v309_v11 = vsel %vm29_vm1, %v296_v10, -inf }
 0x1af   :  { %310 = vmax.xlane.f32.xlu1 %v309_v11 }
 0x1b2   :  { %v250_v12 = vpop.f32.mrf.mxu3 }
 0x1b3   :  { %v303_v15 = vsel %vm29_vm1, %v250_v12, -inf }
 0x1b5   :  { %v298_v14 = vpop.f32.mrf.mxu1 }
 0x1b7   :  { %304 = vmax.xlane.f32.xlu1 %v303_v15 }
 0x1ba   :  { %v252_v16 = vpop.f32.mrf.mxu3 }
 0x1bb   :  { %348 = vrot.lane.b32.xlu0 %v814_v13, %s745_s27 }
 0x1d0   :  { %432 = vrot.lane.b32.xlu1 %v814_v13, %s746_s28 }
 0x1f9   :  { %v162_v17 = vpop.xlane.xlu2 %161 }
 0x1fa   :  { %v172_v19 = vsub.f32 %v84_v51, %v162_v17 }
 0x1fc   :  { %v176_v20 = vmul.f32 1.442695, %v172_v19 }
 0x1fe   :  { %706 = vpow2.f32 %v176_v20 }
 0x204   :  { %v874_v21 = vpop.eup %706 }
 0x205   :  { %v184_v22 = vsel %vm29_vm1, %v874_v21, 0.0 }
 0x206   :  { %185 = vadd.xlane.f32.xlu2 %v184_v22 }
 0x207   :  { %v165_v24 = vpop.xlane.xlu2 %164 }
 0x208   :  { %v173_v25 = vsub.f32 %v108_v54, %v165_v24  ;;  %v302_v26 = vpop.xlane.xlu0 %301 }
 0x209   :  { %v312_v27 = vsub.f32 %v227_v55, %v302_v26 }
 0x20a   :  { %v178_v29 = vmul.f32 1.442695, %v173_v25 }
 0x20b   :  { %v316_v30 = vmul.f32 1.442695, %v312_v27 }
 0x20c   :  { %708 = vpow2.f32 %v178_v29 }
 0x20d   :  { %710 = vpow2.f32 %v316_v30 }
 0x212   :  { %v878_v31 = vpop.eup %708  ;;  %v308_v13 = vpop.xlane.xlu0 %307 }
 0x213   :  { %v711_v32 = vpop.eup %710  ;;  %v314_v33 = vsub.f32 %v273_v61, %v308_v13  ;;  %v187_v34 = vsel %vm29_vm1, %v878_v31, 0.0 }
 0x214   :  { %188 = vadd.xlane.f32.xlu2 %v187_v34  ;;  %v324_v35 = vsel %vm29_vm1, %v711_v32, 0.0 }
 0x215   :  { %v320_v36 = vmul.f32 1.442695, %v314_v33  ;;  %325 = vadd.xlane.f32.xlu1 %v324_v35 }
 0x217   :  { %712 = vpow2.f32 %v320_v36 }
 0x21a   :  { %v171_v41 = vpop.xlane.xlu0 %170 }
 0x21b   :  { %v175_v57 = vsub.f32 %v859_v60, %v171_v41 }
 0x21d   :  { %v883_v37 = vpop.eup %712  ;;  %v182_v58 = vmul.f32 1.442695, %v175_v57  ;;  %v529_v57 = vld [vmem:[%s986_s2] sm:$0xf] }
 0x21e   :  { %v330_v38 = vsel %vm29_vm1, %v883_v37, 0.0 }
 0x21f   :  { %331 = vadd.xlane.f32.xlu0 %v330_v38 }
 0x222   :  { %v311_v39 = vpop.xlane.xlu1 %310 }
 0x223   :  { %v315_v40 = vsub.f32 %v296_v10, %v311_v39 }
 0x225   :  { %v322_v42 = vmul.f32 1.442695, %v315_v40 }
 0x227   :  { %714 = vpow2.f32 %v322_v42 }
 0x22a   :  { %v305_v43 = vpop.xlane.xlu1 %304 }
 0x22b   :  { %v313_v44 = vsub.f32 %v250_v12, %v305_v43 }
 0x22d   :  { %v887_v45 = vpop.eup %714  ;;  %v318_v46 = vmul.f32 1.442695, %v313_v44  ;;  %v349_v47 = vpop.permute.xlu0 %348 }
 0x22e   :  { %390 = vrot.lane.b32.xlu1 %v824_v23, %s745_s27  ;;  %v354_v48 = vsel %vm36_vm0, %v349_v47, 0  ;;  %v333_v49 = vsel %vm29_vm1, %v887_v45, 0.0 }
 0x22f   :  { %716 = vpow2.f32 %v318_v46  ;;  %363 = vmatpush.bf16.msrb.mxu2 %v354_v48  ;;  %334 = vadd.xlane.f32.xlu2 %v333_v49 }
 0x233   :  { %474 = vrot.lane.b32.xlu0 %v824_v23, %s746_s28  ;;  %v168_v23 = vpop.xlane.xlu2 %167 }
 0x234   :  { %v174_v54 = vsub.f32 %v862_v63, %v168_v23 }
 0x235   :  { %v896_v50 = vpop.eup %716 }
 0x236   :  { %411 = vrot.lane.b32.xlu1 %v829_v28, %s745_s27  ;;  %v327_v51 = vsel %vm29_vm1, %v896_v50, 0.0  ;;  %v180_v55 = vmul.f32 1.442695, %v174_v54 }
 0x237   :  { %328 = vadd.xlane.f32.xlu2 %v327_v51 }
 0x238   :  { %718 = vpow2.f32 %v180_v55 }
 0x239   :  { %720 = vpow2.f32 %v182_v58  ;;  %v540_v58 = vsel %vm36_vm0, %v529_v57, 0 }
 0x23b   :  { %495 = vrot.lane.b32.xlu0 %v829_v28, %s746_s28 }
 0x23e   :  { %v910_v56 = vpop.eup %718 }
 0x23f   :  { %v190_v28 = vsel %vm29_vm1, %v910_v56, 0.0  ;;  %v915_v59 = vpop.eup %720 }
 0x240   :  { %v193_v61 = vsel %vm29_vm1, %v915_v59, 0.0 }
 0x242   :  { %v433_v52 = vpop.permute.xlu1 %432 }
 0x243   :  { %v438_v53 = vsel %vm36_vm0, %v433_v52, 0  ;;  %520 = vrot.lane.b32.xlu0 %v811_v8, %s747_s29 }
 0x244   :  { %447 = vmatpush.bf16.msra.mxu2 %v438_v53 }
 0x24b   :  { %634 = vrot.lane.b32.xlu0 %v811_v8, %s748_s30 }
 0x24f   :  { %453 = vrot.lane.b32.xlu2 %v818_v18, %s746_s28 }
 0x260   :  { %191 = vadd.xlane.f32.xlu1 %v190_v28 }
 0x278   :  { %194 = vadd.xlane.f32.xlu2 %v193_v61 }
 0x279   :  { %530 = vrot.lane.b32.xlu1 %v811_v8, %s749_s5  ;;  %v186_v18 = vpop.xlane.xlu2 %185 }
 0x27a   :  { %722 = vrcp.f32 %v186_v18 }
 0x280   :  { %v723_v63 = vpop.eup %722 }
 0x281   :  { %v200_v60 = vmul.f32 %v723_v63, %v874_v21 }
 0x283   :  { %v204_v17 = vpack.c.bf16 %v200_v60, %v200_v60 }
 0x287   :  { %v189_v11 = vpop.xlane.xlu2 %188 }
 0x288   :  { %v326_v62 = vpop.xlane.xlu1 %325 }
 0x289   :  { %724 = vrcp.f32 %v326_v62 }
 0x28f   :  { %v725_v0 = vpop.eup %724 }
 0x290   :  { %v340_v3 = vmul.f32 %v725_v0, %v711_v32  ;;  %627 = vrot.lane.b32.xlu2 %v811_v8, %s750_s6 }
 0x292   :  { %v344_v4 = vpack.c.bf16 %v340_v3, %v340_v3  ;;  %v516_v7 = vadd.f32 %v340_v3, %v200_v60  ;;  %v332_v9 = vpop.xlane.xlu0 %331 }
 0x293   :  { %726 = vrcp.f32 %v332_v9 }
 0x294   :  { %684 = vmatmul.msk.bf16.vlgmr.msrb.gmra.mxu2 %vm29_vm1, %v344_v4  ;;  %v641_v10 = vmul.f32 0.5, %v516_v7 }
 0x295   :  { %549 = vmatpush.bf16.msrb.mxu2 %v540_v58 }
 0x296   :  { %649 = vrot.lane.b32.xlu0 %v641_v10, %s751_s7 }
 0x299   :  { %v727_v12 = vpop.eup %726 }
 0x29a   :  { %v342_v14 = vmul.f32 %v727_v12, %v883_v37 }
 0x29c   :  { %v346_v8 = vpack.c.bf16 %v342_v14, %v342_v14 }
 0x2a0   :  { %v391_v15 = vpop.permute.xlu1 %390 }
 0x2a1   :  { %v396_v16 = vsel %vm36_vm0, %v391_v15, 0 }
 0x2a2   :  { %v335_v19 = vpop.xlane.xlu2 %334  ;;  %405 = vmatpush.bf16.msra.mxu0 %v396_v16 }
 0x2a3   :  { %728 = vrcp.f32 %v335_v19 }
 0x2a4   :  { %688 = vmatmul.msk.bf16.vlgmr.msra.gmra.mxu2 %vm29_vm1, %v204_v17  ;;  %730 = vrcp.f32 %v189_v11 }
 0x2a5   :  { %v475_v20 = vpop.permute.xlu0 %474  ;;  %686 = vmatmul.msk.bf16.vlgmr.msra.gmra.mxu0 %vm29_vm1, %v346_v8 }
 0x2a6   :  { %v480_v21 = vsel %vm36_vm0, %v475_v20, 0 }
 0x2a7   :  { %489 = vmatpush.bf16.msrb.mxu0 %v480_v21 }
 0x2a8   :  { %v412_v22 = vpop.permute.xlu1 %411 }
 0x2a9   :  { %v729_v24 = vpop.eup %728  ;;  %v417_v25 = vsel %vm36_vm0, %v412_v22, 0 }
 0x2aa   :  { %v343_v26 = vmul.f32 %v729_v24, %v887_v45  ;;  %v329_v27 = vpop.xlane.xlu2 %328  ;;  %426 = vmatpush.bf16.msrb.mxu1 %v417_v25  ;;  %v731_v32 = vpop.eup %730 }
 0x2ab   :  { %732 = vrcp.f32 %v329_v27  ;;  %v201_v36 = vmul.f32 %v731_v32, %v878_v31 }
 0x2ac   :  { %v347_v29 = vpack.c.bf16 %v343_v26, %v343_v26 }
 0x2ad   :  { %v496_v30 = vpop.permute.xlu0 %495  ;;  %v205_v41 = vpack.c.bf16 %v201_v36, %v201_v36 }
 0x2ae   :  { %v501_v13 = vsel %vm36_vm0, %v496_v30, 0  ;;  %687 = vmatmul.msk.bf16.vlgmr.msrb.gmra.mxu1 %vm29_vm1, %v347_v29 }
 0x2af   :  { %510 = vmatpush.bf16.msra.mxu1 %v501_v13  ;;  %v752_v13 = vmov 32.0  }
 0x2b1   :  { %v733_v33 = vpop.eup %732 }
 0x2b2   :  { %v341_v34 = vmul.f32 %v733_v33, %v896_v50  ;;  %v454_v35 = vpop.permute.xlu2 %453 }
 0x2b3   :  { %v459_v37 = vsel %vm36_vm0, %v454_v35, 0 }
 0x2b4   :  { %v345_v38 = vpack.c.bf16 %v341_v34, %v341_v34  ;;  %468 = vmatpush.bf16.msra.mxu3 %v459_v37  ;;  %v517_v39 = vadd.f32 %v341_v34, %v201_v36 }
 0x2b5   :  { %v521_v60 = vpop.permute.xlu0 %520 }
 0x2b6   :  { %685 = vmatmul.msk.bf16.vlgmr.msrb.gmra.mxu3 %vm29_vm1, %v345_v38  ;;  %v642_v40 = vmul.f32 0.5, %v517_v39 }
 0x2b8   :  { %651 = vrot.lane.b32.xlu0 %v642_v40, %s751_s7 }
 0x2c6   :  { %689 = vmatmul.msk.bf16.vlgmr.msra.gmra.mxu3 %vm29_vm1, %v205_v41 }
 0x2d3   :  { %v192_v42 = vpop.xlane.xlu1 %191 }
 0x2d4   :  { %734 = vrcp.f32 %v192_v42 }
 0x2da   :  { %v735_v43 = vpop.eup %734 }
 0x2db   :  { %v202_v44 = vmul.f32 %v735_v43, %v910_v56 }
 0x2dd   :  { %v206_v45 = vpack.c.bf16 %v202_v44, %v202_v44  ;;  %v518_v31 = vadd.f32 %v342_v14, %v202_v44 }
 0x2df   :  { %690 = vmatmul.msk.bf16.vlgmr.msrb.gmra.mxu0 %vm29_vm1, %v206_v45  ;;  %v643_v46 = vmul.f32 0.5, %v518_v31 }
 0x2e1   :  { %653 = vrot.lane.b32.xlu1 %v643_v46, %s751_s7 }
 0x2eb   :  { %v195_v47 = vpop.xlane.xlu2 %194  ;;  %v531_v24 = vpop.permute.xlu1 %530 }
 0x2ec   :  { %736 = vrcp.f32 %v195_v47 }
 0x2ed   :  { %738 = vrcp.f32 %v752_v13 }
 0x2f2   :  { %v737_v48 = vpop.eup %736 }
 0x2f3   :  { %v203_v49 = vmul.f32 %v737_v48, %v915_v59  ;;  %v739_v37 = vpop.eup %738 }
 0x2f4   :  { %v583_v43 = vmul.f32 32.0, %v739_v37  ;;  %vm587_vm3 = vweird.f32 %v739_v37 }
 0x2f5   :  { %v207_v50 = vpack.c.bf16 %v203_v49, %v203_v49  ;;  %v519_v51 = vadd.f32 %v343_v26, %v203_v49 }
 0x2f6   :  { %v584_v31 = vsub.f32 1.0, %v583_v43 }
 0x2f7   :  { %691 = vmatmul.msk.bf16.vlgmr.msra.gmra.mxu1 %vm29_vm1, %v207_v50  ;;  %v644_v52 = vmul.f32 0.5, %v519_v51 }
 0x2f8   :  { %v585_v48 = vmul.f32 %v739_v37, %v584_v31 }
 0x2f9   :  { %655 = vrot.lane.b32.xlu2 %v644_v52, %s751_s7 }
 0x2fa   :  { %v586_v51 = vadd.f32 %v739_v37, %v585_v48 }
 0x317   :  { %v365_v53 = vpop.f32.mrf.mxu2 }
 0x31f   :  { %v367_v23 = vpop.f32.mrf.mxu2 }
 0x320   :  { %v588_v23 = vsel %vm587_vm3, %v739_v37, %v586_v51 }
 0x322   :  { %v407_v54 = vpop.f32.mrf.mxu0 }
 0x327   :  { %v449_v55 = vpop.f32.mrf.mxu2 }
 0x328   :  { %v450_v63 = vadd.f32 %v449_v55, %v365_v53 }
 0x32a   :  { %v409_v56 = vpop.f32.mrf.mxu0  ;;  %v523_v4 = vadd.f32 %v521_v60, %v450_v63 }
 0x32b   :  { %v428_v28 = vpop.f32.mrf.mxu1 }
 0x32f   :  { %v451_v59 = vpop.f32.mrf.mxu2 }
 0x333   :  { %v430_v61 = vpop.f32.mrf.mxu1 }
 0x339   :  { %v386_v18 = vpop.f32.mrf.mxu3 }
 0x341   :  { %v388_v62 = vpop.f32.mrf.mxu3 }
 0x349   :  { %v470_v0 = vpop.f32.mrf.mxu3 }
 0x34a   :  { %v471_v3 = vadd.f32 %v470_v0, %v386_v18 }
 0x34c   :  { %v524_v7 = vadd.f32 %v521_v60, %v471_v3 }
 0x34e   :  { %v527_v9 = vpack.c.bf16 %v524_v7, %v523_v4 }
 0x350   :  { %692 = vmatmul.msk.bf16.vlgmr.msrb.gmra.mxu2 %vm29_vm1, %v527_v9 }
 0x351   :  { %v472_v10 = vpop.f32.mrf.mxu3 }
 0x35c   :  { %v491_v11 = vpop.f32.mrf.mxu0 }
 0x35d   :  { %v492_v14 = vadd.f32 %v491_v11, %v407_v54 }
 0x35f   :  { %v525_v17 = vadd.f32 %v521_v60, %v492_v14 }
 0x364   :  { %v493_v12 = vpop.f32.mrf.mxu0 }
 0x374   :  { %v512_v15 = vpop.f32.mrf.mxu1 }
 0x375   :  { %v513_v16 = vadd.f32 %v512_v15, %v428_v28 }
 0x377   :  { %v526_v19 = vadd.f32 %v521_v60, %v513_v16 }
 0x379   :  { %v528_v8 = vpack.c.bf16 %v526_v19, %v525_v17  ;;  %v635_v19 = vpop.permute.xlu0 %634 }
 0x37b   :  { %693 = vmatmul.msk.bf16.gmra.mxu2 %vm29_vm1, %v528_v8 }
 0x37c   :  { %v514_v20 = vpop.f32.mrf.mxu1 }
 0x3d3   :  { %v551_v21 = vpop.f32.mrf.mxu2 }
 0x3d4   :  { %v552_v26 = vadd.f32 %v551_v21, %v531_v24 }
 0x3d6   :  { %v561_v32 = vadd.f32 %v552_v26, %v784_v1  ;;  %v650_v26 = vpop.permute.xlu0 %649 }
 0x3d8   :  { %v565_v35 = vmax.f32 %v561_v32, 0.0 }
 0x3da   :  { %v569_v41 = vsel %vm29_vm1, %v565_v35, 0.0 }
 0x3db   :  { %v553_v22 = vpop.f32.mrf.mxu2 }
 0x3dc   :  { %v554_v25 = vadd.f32 %v553_v22, %v531_v24 }
 0x3de   :  { %v562_v29 = vadd.f32 %v554_v25, %v789_v2  ;;  %v628_v25 = vpop.permute.xlu2 %627 }
 0x3e0   :  { %v566_v34 = vmax.f32 %v562_v29, 0.0 }
 0x3e2   :  { %v570_v39 = vsel %vm29_vm1, %v566_v34, 0.0 }
 0x3e3   :  { %v571_v44 = vadd.f32 %v570_v39, %v569_v41 }
 0x3e6   :  { %v656_v43 = vpop.permute.xlu2 %655 }
 0x3fe   :  { %v556_v27 = vpop.f32.mrf.mxu2 }
 0x3ff   :  { %v557_v30 = vadd.f32 %v556_v27, %v531_v24 }
 0x401   :  { %v563_v33 = vadd.f32 %v557_v30, %v798_v5 }
 0x403   :  { %v567_v36 = vmax.f32 %v563_v33, 0.0 }
 0x405   :  { %v572_v42 = vsel %vm29_vm1, %v567_v36, 0.0 }
 0x406   :  { %v558_v38 = vpop.f32.mrf.mxu2  ;;  %v573_v1 = vadd.f32 %v572_v42, %v571_v44  ;;  %v652_v42 = vpop.permute.xlu0 %651 }
 0x407   :  { %v559_v40 = vadd.f32 %v558_v38, %v531_v24 }
 0x409   :  { %v564_v2 = vadd.f32 %v559_v40, %v803_v6 }
 0x40b   :  { %v568_v45 = vmax.f32 %v564_v2, 0.0  ;;  %v654_v2 = vpop.permute.xlu1 %653 }
 0x40d   :  { %v574_v5 = vsel %vm29_vm1, %v568_v45, 0.0 }
 0x40e   :  { %v575_v46 = vadd.f32 %v574_v5, %v573_v1 }
 0x410   :  { %v576_v47 = vrot.slane %v575_v46, 4 }
 0x412   :  { %v577_v49 = vadd.f32 %v576_v47, %v575_v46 }
 0x414   :  { %v578_v50 = vrot.slane %v577_v49, 2 }
 0x416   :  { %v579_v52 = vadd.f32 %v578_v50, %v577_v49 }
 0x418   :  { %v580_v53 = vrot.slane %v579_v52, 1 }
 0x41a   :  { %v581_v54 = vadd.f32 %v580_v53, %v579_v52 }
 0x41c   :  { %v589_v55 = vmul.f32 %v588_v23, %v581_v54 }
 0x41e   :  { %v590_v6 = vsub.f32 %v565_v35, %v589_v55  ;;  %v591_v56 = vsub.f32 %v566_v34, %v589_v55  ;;  %v592_v28 = vsub.f32 %v567_v36, %v589_v55  ;;  %v593_v57 = vsub.f32 %v568_v45, %v589_v55 }
 0x420   :  { %v594_v58 = vmul.f32 %v590_v6, %v590_v6  ;;  %v595_v59 = vmul.f32 %v591_v56, %v591_v56  ;;  %v596_v61 = vmul.f32 %v592_v28, %v592_v28  ;;  %v597_v18 = vmul.f32 %v593_v57, %v593_v57 }
 0x422   :  { %v598_v62 = vsel %vm29_vm1, %v594_v58, 0.0  ;;  %v599_v63 = vsel %vm29_vm1, %v595_v59, 0.0  ;;  %v601_v3 = vsel %vm29_vm1, %v596_v61, 0.0  ;;  %v603_v4 = vsel %vm29_vm1, %v597_v18, 0.0 }
 0x423   :  { %v600_v0 = vadd.f32 %v599_v63, %v598_v62 }
 0x425   :  { %v602_v60 = vadd.f32 %v601_v3, %v600_v0 }
 0x427   :  { %v604_v7 = vadd.f32 %v603_v4, %v602_v60 }
 0x429   :  { %v605_v9 = vrot.slane %v604_v7, 4 }
 0x42b   :  { %v606_v10 = vadd.f32 %v605_v9, %v604_v7 }
 0x42d   :  { %v607_v11 = vrot.slane %v606_v10, 2 }
 0x42f   :  { %v608_v12 = vadd.f32 %v607_v11, %v606_v10 }
 0x431   :  { %v609_v14 = vrot.slane %v608_v12, 1 }
 0x433   :  { %v610_v15 = vadd.f32 %v609_v14, %v608_v12 }
 0x435   :  { %v611_v16 = vmul.f32 %v610_v15, %v588_v23 }
 0x437   :  { %v612_v17 = vadd.f32 1e-05, %v611_v16 }
 0x439   :  { %740 = vrsqrt.f32 %v612_v17  ;;  %vm619_vm5 = vweird.f32 %v612_v17 }
 0x43f   :  { %v741_v8 = vpop.eup %740 }
 0x440   :  { %v614_v20 = vmul.f32 %v741_v8, %v612_v17  ;;  %vm620_vm4 = vweird.f32 %v741_v8 }
 0x441   :  { %vm621_vm6 = vmor %vm619_vm5, %vm620_vm4 }
 0x442   :  { %v615_v21 = vmul.f32 %v741_v8, %v614_v20 }
 0x444   :  { %v616_v22 = vmul.f32 0.5, %v615_v21 }
 0x446   :  { %v617_v24 = vsub.f32 1.5, %v616_v22 }
 0x448   :  { %v618_v27 = vmul.f32 %v741_v8, %v617_v24 }
 0x44a   :  { %v622_v29 = vsel %vm621_vm6, %v741_v8, %v618_v27 }
 0x44b   :  { %v623_v30 = vmul.f32 %v622_v29, %v590_v6  ;;  %v624_v13 = vmul.f32 %v622_v29, %v591_v56  ;;  %v625_v32 = vmul.f32 %v622_v29, %v592_v28  ;;  %v626_v33 = vmul.f32 %v622_v29, %v593_v57 }
 0x44d   :  { %v630_v34 = vmul.f32 %v628_v25, %v623_v30  ;;  %v631_v35 = vmul.f32 %v628_v25, %v624_v13  ;;  %v632_v36 = vmul.f32 %v628_v25, %v625_v32  ;;  %v633_v37 = vmul.f32 %v628_v25, %v626_v33 }
 0x44f   :  { %v637_v38 = vadd.f32 %v635_v19, %v630_v34  ;;  %v638_v39 = vadd.f32 %v635_v19, %v631_v35  ;;  %v639_v40 = vadd.f32 %v635_v19, %v632_v36  ;;  %v640_v41 = vadd.f32 %v635_v19, %v633_v37 }
 0x451   :  { %v661_v44 = vsel %vm29_vm1, %v637_v38, %v650_v26  ;;  %v662_v45 = vsel %vm29_vm1, %v638_v39, %v652_v42  ;;  %v663_v1 = vsel %vm29_vm1, %v639_v40, %v654_v2  ;;  %v664_v5 = vsel %vm29_vm1, %v640_v41, %v656_v43 }
 0x452   :  { %666 = vst.msk [vmem:[%s987_s4] sm:$0xff] %vm665_vm7, %v661_v44 }
 0x453   :  { %667 = vst.msk [vmem:[%s987_s4 + $0x8] sm:$0xff] %vm665_vm7, %v662_v45 }
 0x454   :  { %668 = vst.msk [vmem:[%s987_s4 + $0x10] sm:$0xff] %vm665_vm7, %v663_v1 }
 0x455   :  { %669 = vst.msk [vmem:[%s987_s4 + $0x18] sm:$0xff] %vm665_vm7, %v664_v5 }

</bundles_post_ra>
